<compile_context>
chip_gen: v5e
topology: v5e:2x2
jax: 0.10.0
libtpu: 0.0.40
codegen_flags: <defaults>
</compile_context>

<pallas_src>
import functools
import math

import jax
import jax.numpy as jnp
from jax import lax
from jax.experimental import pallas as pl
from jax.experimental.pallas import tpu as pltpu


def _round_up(x, m):
    return (x + m - 1) // m * m


def _pick_m_tile(M, cap=512):
    """Multiple of 8, sized so the last M tile is not mostly padding."""
    if M <= cap:
        return _round_up(M, 8)
    n_tiles = -(-M // cap)
    return _round_up(-(-M // n_tiles), 8)


def _pick_n_tile(N, single_m_tile):
    """tn that divides N exactly (no weight padding along N).

    Prefers 256-granular tiles (full MXU columns on v6e/v7x), <= 512 wide; if
    there is only one M tile, prefer >= 2 N tiles so both v7x cores get work.
    If N is not a multiple of 128, use the full extent (exempt from the
    (8,128) rule) rather than padding the weight.
    """
    if N % 128 != 0:
        return N
    gran = 256 if N % 256 == 0 else 128
    divisors = [d for d in range(gran, N + 1, gran) if N % d == 0]
    cands = [d for d in divisors if d <= 512]
    if single_m_tile and N >= 2 * gran:
        split = [d for d in cands if d < N]
        if split:
            cands = split
    return max(cands)


def _pick_k_tile(K, cap=1024):
    """Full-extent K (no padding) unless K must be split; then 256-granular."""
    if K <= cap:
        return K, K
    n_tiles = -(-K // cap)
    tk = _round_up(-(-K // n_tiles), 256)
    return tk, _round_up(K, tk)


def _equal_linear_kernel(x_ref, w_ref, b_ref, o_ref, *, scale, n_k):
    """o += x_tile @ w_tile^T (f32 MXU); last K step: o = o*scale + bias."""
    part = lax.dot_general(
        x_ref[...], w_ref[...],
        dimension_numbers=(((1,), (1,)), ((), ())),   # contract dim 1 of both
        preferred_element_type=jnp.float32)

    if n_k == 1:
        # Single K step: fully fused write, no read-modify-write.
        o_ref[...] = part * scale + b_ref[...]
    else:
        k = pl.program_id(2)

        @pl.when(k == 0)
        def _():
            o_ref[...] = part

        @pl.when(k != 0)
        def _():
            o_ref[...] += part

        @pl.when(k == n_k - 1)
        def _():
            o_ref[...] = o_ref[...] * scale + b_ref[...]


def equal_linear(x, weight, bias):
    """EqualLinear.forward: y = x @ (weight * sqrt(2/fan_in)).T + bias.

    x:      (..., in_dim)   float32
    weight: (out_dim, in_dim) float32 (native nn.Linear layout, i.e. weight_orig)
    bias:   (out_dim,)      float32
    """
    in_dim = x.shape[-1]
    out_dim, in_dim_w = weight.shape
    assert in_dim == in_dim_w
    fan_in = in_dim                       # weight.size(1) * weight[0][0].numel()
    scale = math.sqrt(2.0 / fan_in)

    lead = x.shape[:-1]
    xm = x.reshape(-1, in_dim)
    M, K, N = xm.shape[0], in_dim, out_dim

    # --- tile selection (no weight relayout, minimal padding) ---
    tm = _pick_m_tile(M)
    Mp = _round_up(M, tm)
    num_m_tiles = Mp // tm
    tn = _pick_n_tile(N, single_m_tile=(num_m_tiles == 1))
    tk, Kp = _pick_k_tile(K)
    n_k = Kp // tk

    # Pad only x rows (cheap) and, in the rare K-split case, the K axis.
    xp = xm
    if Mp != M or Kp != K:
        xp = jnp.pad(xm, ((0, Mp - M), (0, Kp - K)))
    wk = weight
    if Kp != K:
        # Only reached when K > 1024 and ragged; weight stays untouched otherwise.
        wk = jnp.pad(weight, ((0, 0), (0, Kp - K)))
    b2 = bias.reshape(1, N)

    cost = pl.CostEstimate(
        flops=2 * M * K * N,
        transcendentals=0,
        bytes_accessed=4 * (M * K + N * K + M * N + N),
    )

    out = pl.pallas_call(
        functools.partial(_equal_linear_kernel, scale=scale, n_k=n_k),
        out_shape=jax.ShapeDtypeStruct((Mp, N), jnp.float32),
        grid_spec=pltpu.PrefetchScalarGridSpec(
            num_scalar_prefetch=0,
            grid=(Mp // tm, N // tn, n_k),
            in_specs=[
                pl.BlockSpec((tm, tk), lambda i, j, k: (i, k)),   # x
                pl.BlockSpec((tn, tk), lambda i, j, k: (j, k)),   # weight (native layout)
                pl.BlockSpec((1, tn), lambda i, j, k: (0, j)),    # bias
            ],
            out_specs=pl.BlockSpec((tm, tn), lambda i, j, k: (i, j)),
        ),
        compiler_params=pltpu.CompilerParams(
            dimension_semantics=("parallel", "parallel", "arbitrary")),
        cost_estimate=cost,
    )(xp, wk, b2)

    return out[:M, :].reshape(*lead, out_dim)


if __name__ == "__main__":
    key = jax.random.PRNGKey(0)
    kx, kw = jax.random.split(key)

    in_dim, out_dim = 32, 64
    # (batch=2, seq=8, hidden=32) input; nn.Linear applies over the last dim.
    x = jax.random.normal(kx, (2, 8, in_dim), jnp.float32)
    weight = jax.random.normal(kw, (out_dim, in_dim), jnp.float32)  # weight.data.normal_()
    bias = jnp.zeros((out_dim,), jnp.float32)                       # bias.data.zero_()

    y = jax.block_until_ready(equal_linear(x, weight, bias))

    # Pure-JAX reference of the same forward.
    ref = jnp.einsum("bsk,nk->bsn", x, weight * math.sqrt(2.0 / in_dim),
                     precision=jax.lax.Precision.HIGHEST) + bias

    assert y.shape == (2, 8, out_dim), y.shape
    assert y.dtype == jnp.float32
    assert bool(jnp.all(jnp.isfinite(y)))
    assert bool(jnp.allclose(y, ref, rtol=1e-4, atol=1e-4)), \
        float(jnp.max(jnp.abs(y - ref)))
    print("KERNEL_OK")
</pallas_src>

<mosaic_0001>
module attributes {stable_mosaic.version = 11 : i64} {
  func.func @_equal_linear_kernel(%arg0: i32, %arg1: i32, %arg2: i32, %arg3: memref<16x32xf32, #tpu.memory_space<vmem>>, %arg4: memref<64x32xf32, #tpu.memory_space<vmem>>, %arg5: memref<1x64xf32, #tpu.memory_space<vmem>>, %arg6: memref<16x64xf32, #tpu.memory_space<vmem>>) attributes {dimension_semantics = [#tpu.dimension_semantics<parallel>, #tpu.dimension_semantics<parallel>, #tpu.dimension_semantics<arbitrary>], iteration_bounds = array<i64: 1, 1, 1>, scalar_prefetch = 0 : i64, scratch_operands = 0 : i64, tpu.core_type = #tpu.core_type<tc>, window_params = [{transform_indices = @transform_0, window_bounds = array<i64: 16, 32>}, {transform_indices = @transform_1, window_bounds = array<i64: 64, 32>}, {transform_indices = @transform_2, window_bounds = array<i64: 1, 64>}, {transform_indices = @transform_3, window_bounds = array<i64: 16, 64>}]} {
    %c0 = arith.constant 0 : index
    %c0_0 = arith.constant 0 : index
    %0 = vector.load %arg3[%c0, %c0_0] : memref<16x32xf32, #tpu.memory_space<vmem>>, vector<16x32xf32>
    %c0_1 = arith.constant 0 : index
    %c0_2 = arith.constant 0 : index
    %1 = vector.load %arg4[%c0_1, %c0_2] : memref<64x32xf32, #tpu.memory_space<vmem>>, vector<64x32xf32>
    %cst = arith.constant dense<0.000000e+00> : vector<16x64xf32>
    %2 = tpu.matmul %0, %1, %cst {dimension_numbers = #tpu.dot_dimension_numbers<[1], [1], [0], [0], [0, 0, 1, 0], [], []>} : vector<16x32xf32>, vector<64x32xf32>, vector<16x64xf32> -> vector<16x64xf32>
    %cst_3 = arith.constant 2.500000e-01 : f32
    %3 = vector.broadcast %cst_3 : f32 to vector<16x64xf32>
    %4 = arith.mulf %2, %3 : vector<16x64xf32>
    %c0_4 = arith.constant 0 : index
    %c0_5 = arith.constant 0 : index
    %5 = vector.load %arg5[%c0_4, %c0_5] : memref<1x64xf32, #tpu.memory_space<vmem>>, vector<1x64xf32>
    %6 = vector.broadcast %5 : vector<1x64xf32> to vector<16x64xf32>
    %7 = arith.addf %4, %6 : vector<16x64xf32>
    %c0_6 = arith.constant 0 : index
    %c0_7 = arith.constant 0 : index
    %8 = vector.load %arg6[%c0_6, %c0_7] : memref<16x64xf32, #tpu.memory_space<vmem>>, vector<16x64xf32>
    tpu.vector_store %arg6[%c0_6, %c0_7], %7 {strides = array<i32>} : memref<16x64xf32, #tpu.memory_space<vmem>>, vector<16x64xf32>,
    return
  }
  func.func @transform_0(%arg0: i32, %arg1: i32, %arg2: i32) -> (i32, i32) {
    %c0_i32 = arith.constant 0 : i32
    return %arg0, %arg2 : i32, i32
  }
  func.func @transform_1(%arg0: i32, %arg1: i32, %arg2: i32) -> (i32, i32) {
    %c0_i32 = arith.constant 0 : i32
    return %arg1, %arg2 : i32, i32
  }
  func.func @transform_2(%arg0: i32, %arg1: i32, %arg2: i32) -> (i32, i32) {
    %c0_i32 = arith.constant 0 : i32
    %c0_i32_0 = arith.constant 0 : i32
    return %c0_i32, %arg1 : i32, i32
  }
  func.func @transform_3(%arg0: i32, %arg1: i32, %arg2: i32) -> (i32, i32) {
    %c0_i32 = arith.constant 0 : i32
    return %arg0, %arg1 : i32, i32
  }
}

</mosaic_0001>

<bundles_post_ra>
// kernel: tpu_custom_call.1
= control target key start
LH: loop header
LB: loop body
LE: loop exit
PB: predicated region body
PF: predicated region fallthrough
CT: control target
= control target key end

     0   :  { %vm25_vm0 = vcmask 261120   ;;  %s233_s0 = inlined_call_operand.vmem [shape: f32[16,32], index: 0, kind: input, shape index: {}]   ;;  %s234_s1 = inlined_call_operand.vmem [shape: f32[64,32], index: 1, kind: input, shape index: {}]   ;;  %s235_s2 = inlined_call_operand.vmem [shape: f32[1,64], index: 2, kind: input, shape index: {}]   ;;  %s236_s3 = inlined_call_operand.hbm [shape: f32[16,64], index: 3, kind: output, shape index: {}]  }
   0x1   :  { %v24_v0 = vld [vmem:[%s234_s1 + $0x38] sm:$0xff]  ;;  %v23_v1 = vld [vmem:[%s234_s1 + $0x30] sm:$0xff] }
   0x2   :  { %108 = vmatpush.xpose.msk.msra.mxu0 %vm25_vm0, %v24_v0  ;;  %118 = vmatpush.xpose.msk.msra.mxu1 %vm25_vm0, %v24_v0 }
   0x3   :  { %8 = vsyncpa [#allocation3], 0  ;;  %v22_v2 = vld [vmem:[%s234_s1 + $0x28] sm:$0xff]  ;;  %v21_v3 = vld [vmem:[%s234_s1 + $0x20] sm:$0xff]  ;;  %s96_s10 = sshll.u32 %s236_s3, 4  ;;  %vm87_vm1 = vcmask 523264   ;;  %s97_s10 = int_to_ptr.hbm [resolvable:$true] %s96_s10 }
   0x4   :  { %v20_v4 = vld [vmem:[%s234_s1 + $0x18] sm:$0xff]  ;;  %v19_v5 = vld [vmem:[%s234_s1 + $0x10] sm:$0xff]  ;;  %v18_v6 = vld [vmem:[%s234_s1 + $0x8] sm:$0xff]  ;;  %s158_s11 = smov 8  }
   0x5   :  { %v17_v7 = vld [vmem:[%s234_s1] sm:$0xff]  ;;  %v16_v9 = vld [vmem:[%s233_s0 + $0x8] sm:$0xff]  ;;  %s156_s1 = smov [#allocation2]  }
   0x6   :  { %109 = vmatpush.xpose.msk.msra.mxu0 %vm25_vm0, %v23_v1  ;;  %119 = vmatpush.xpose.msk.msra.mxu1 %vm25_vm0, %v23_v1  ;;  %v15_v8 = vld [vmem:[%s233_s0] sm:$0xff]  ;;  %s94_s7 = sshll.u32 %s156_s1, 4  ;;  %s157_s0 = smov 128   ;;  %s95_s7 = int_to_ptr.vmem [resolvable:$true] %s94_s7 }
   0x7   :  { %v129_v10 = vld [vmem:[%s235_s2] ss:$0 sm:$0xff] }
   0xa   :  { %110 = vmatpush.xpose.msk.msra.mxu0 %vm25_vm0, %v22_v2  ;;  %120 = vmatpush.xpose.msk.msra.mxu1 %vm25_vm0, %v22_v2 }
   0xe   :  { %111 = vmatpush.xpose.msk.msra.mxu0 %vm25_vm0, %v21_v3  ;;  %121 = vmatpush.xpose.msk.msra.mxu1 %vm25_vm0, %v21_v3 }
  0x12   :  { %112 = vmatpush.xpose.msk.msra.mxu0 %vm25_vm0, %v20_v4  ;;  %122 = vmatpush.xpose.msk.msra.mxu1 %vm25_vm0, %v20_v4 }
  0x16   :  { %113 = vmatpush.xpose.msk.msra.mxu0 %vm25_vm0, %v19_v5  ;;  %123 = vmatpush.xpose.msk.msra.mxu1 %vm25_vm0, %v19_v5 }
  0x1a   :  { %114 = vmatpush.xpose.msk.msra.mxu0 %vm25_vm0, %v18_v6  ;;  %124 = vmatpush.xpose.msk.msra.mxu1 %vm25_vm0, %v18_v6 }
  0x1e   :  { %115 = vmatpush.xpose.msk.msra.mxu0 %vm25_vm0, %v17_v7  ;;  %125 = vmatpush.xpose.msk.msra.mxu1 %vm25_vm0, %v17_v7 }
  0x21   :  { %116 = vmatmul.msk.f32.vlgmr.msra.gmra.mxu0 %vm25_vm0, %v15_v8  ;;  %117 = vmatmul.msk.f32.vlgmr.msra.gmra.mxu1 %vm25_vm0, %v16_v9 }
  0x9e   :  { %v73_v11 = vpop.f32.mrf.mxu0  ;;  %v76_v12 = vpop.f32.mrf.mxu1 }
  0x9f   :  { %v79_v13 = vmul.f32 0.25, %v73_v11  ;;  %v80_v14 = vmul.f32 0.25, %v76_v12 }
  0xa1   :  { %v85_v15 = vadd.f32 %v129_v10, %v79_v13  ;;  %v86_v16 = vadd.f32 %v129_v10, %v80_v14 }
  0xa3   :  { %88 = vst.msk [vmem:[#allocation2] sm:$0xff] %vm87_vm1, %v85_v15 }
  0xa4   :  { %89 = vst.msk [vmem:[#allocation2 + $0x8] sm:$0xff] %vm87_vm1, %v86_v16 }
  0xa5   :  { %102 = dma.vmem_to_hbm [thread:$0]  %s95_s7, 256, %s97_s10, [#allocation3], %s157_s0, %s157_s0, %s158_s11  }
  0xa6   :  { %154 = dma.done.wait [#allocation3], 256  }
  0xa7   :  { %155 = vsyncadd [#allocation3], 4294967040 }
  0xa8   :  { %107 = vsyncpa [#allocation3], 1 }

</bundles_post_ra>
